<compile_context>
chip_gen: v7x
topology: tpu7x:2x2x1
jax: 0.10.0
libtpu: 0.0.40
codegen_flags: <defaults>
</compile_context>

<pallas_src>
import jax
import jax.numpy as jnp
from jax.experimental import pallas as pl
from jax.experimental.pallas import tpu as pltpu


def _proj_kernel(a_ref, w_ref, b_ref, o_ref):
    # (TM, K)bf16 @ (K, Ep)bf16 -> f32 accumulate on the MXU; bias add in f32
    # (v5e VALU has no bf16), final store in o_ref.dtype (bf16 by default).
    acc = jnp.dot(a_ref[...], w_ref[...], preferred_element_type=jnp.float32)
    o_ref[...] = (acc + b_ref[...]).astype(o_ref.dtype)


def _round_up(x, m):
    return ((x + m - 1) // m) * m


def _choose_tm(M, tm_max):
    # >= 2 grid steps whenever M allows it so v7x's two TensorCores both get
    # work; tiles in MXU/bf16-friendly multiples, capped at tm_max to bound
    # the double-buffered VMEM footprint.
    if M <= 32:
        return M                      # single block; block dim == full dim is legal
    half = pl.cdiv(M, 2)
    unit = 16 if half < 256 else 256
    return min(tm_max, _round_up(half, unit))


def patch_embed_3d(x, weight, bias, patch_size=(2, 4, 4), *,
                   channels_last=False, out_dtype=jnp.bfloat16, tm_max=8192):
    """Equivalent of PatchEmbed3D.forward with norm_layer=None.

    x: (B, C, D, H, W) NCDHW, weight: (E, C, pd, ph, pw) OIDHW, bias: (E,).
    Returns NCDHW (B, E, D', H', W'), or (B, D', H', W', E) if channels_last.
    """
    pd, ph, pw = patch_size
    B, C, D, H, W = x.shape
    E = weight.shape[0]

    # bf16 operands for the MXU; cast before packing so the pack pass itself
    # only moves bf16.
    xb = x.astype(jnp.bfloat16)

    # Right-pad spatial dims to multiples of the patch size (matches the F.pad
    # calls in the PyTorch forward: zeros on the right).
    pad_d, pad_h, pad_w = (-D) % pd, (-H) % ph, (-W) % pw
    if pad_d or pad_h or pad_w:
        xb = jnp.pad(xb, ((0, 0), (0, 0), (0, pad_d), (0, pad_h), (0, pad_w)))
    Dp, Hp, Wp = (D + pad_d) // pd, (H + pad_h) // ph, (W + pad_w) // pw

    # Patch extraction -> (M, K); XLA fuses cast+pad+transpose into one pack
    # pass (one f32 read of x, one bf16 write).  No extra M/K padding copy.
    # TODO(synk): fuse this extraction into the kernel with manual strided DMA
    # (memory_space=pl.ANY) to drop the remaining wrapper-side pass.
    xp = xb.reshape(B, C, Dp, pd, Hp, ph, Wp, pw)
    xp = xp.transpose(0, 2, 4, 6, 1, 3, 5, 7)      # (B, Dp, Hp, Wp, C, pd, ph, pw)
    M = B * Dp * Hp * Wp
    K = C * pd * ph * pw
    a = xp.reshape(M, K)

    # Lane-align only E so stores are unmasked/lane-dense on all generations.
    Ep = _round_up(E, 128)
    w = weight.reshape(E, K).T.astype(jnp.bfloat16)          # (K, E), Conv3d order
    if Ep != E:
        w = jnp.pad(w, ((0, 0), (0, Ep - E)))
    b = bias.astype(jnp.float32).reshape(1, E)
    if Ep != E:
        b = jnp.pad(b, ((0, 0), (0, Ep - E)))

    TM = _choose_tm(M, tm_max)
    grid = (pl.cdiv(M, TM),)

    out_itemsize = jnp.dtype(out_dtype).itemsize
    cost = pl.CostEstimate(
        flops=2 * M * K * E,
        transcendentals=0,
        bytes_accessed=2 * (M * K + K * Ep) + 4 * Ep + out_itemsize * M * Ep,
    )

    out = pl.pallas_call(
        _proj_kernel,
        out_shape=jax.ShapeDtypeStruct((M, Ep), out_dtype),
        grid_spec=pl.GridSpec(
            grid=grid,
            in_specs=[
                pl.BlockSpec((TM, K), lambda i: (i, 0)),   # streamed A tiles (ragged last)
                pl.BlockSpec((K, Ep), lambda i: (0, 0)),   # weight VMEM-resident
                pl.BlockSpec((1, Ep), lambda i: (0, 0)),   # bias VMEM-resident
            ],
            out_specs=pl.BlockSpec((TM, Ep), lambda i: (i, 0)),
        ),
        compiler_params=pltpu.CompilerParams(
            dimension_semantics=("parallel",),             # megacore sharding on v7x
            vmem_limit_bytes=32 * 1024 * 1024,
        ),
        cost_estimate=cost,
    )(a, w, b)

    if Ep != E:
        out = out[:, :E]
    out = out.reshape(B, Dp, Hp, Wp, E)
    if channels_last:
        return out                                          # zero-transpose path
    # NCDHW to match PatchEmbed3D.forward (norm_layer defaults to None -> no norm).
    return out.transpose(0, 4, 1, 2, 3)


if __name__ == "__main__":
    key = jax.random.PRNGKey(0)
    kx, kw, kb = jax.random.split(key, 3)

    # Module defaults: patch_size=(2,4,4), in_chans=3, embed_dim=96.
    patch_size = (2, 4, 4)
    in_chans, embed_dim = 3, 96        # E=96 exercises the lane-padding path

    # Non-divisible D exercises the spatial right-pad; M=294 gives a 2-step
    # ragged parallel grid.
    x = jax.random.normal(kx, (2, in_chans, 5, 28, 28), dtype=jnp.float32)
    weight = jax.random.normal(
        kw, (embed_dim, in_chans) + patch_size, dtype=jnp.float32) * 0.02
    bias = jax.random.normal(kb, (embed_dim,), dtype=jnp.float32) * 0.02

    out = jax.block_until_ready(patch_embed_3d(x, weight, bias, patch_size))

    # Pure-JAX reference: pad + Conv3d(stride == kernel) in NCDHW, built from
    # the same bf16-rounded operands (the kernel's stated precision contract).
    pd, ph, pw = patch_size
    _, _, D, H, W = x.shape
    x_r = x.astype(jnp.bfloat16).astype(jnp.float32)
    w_r = weight.astype(jnp.bfloat16).astype(jnp.float32)
    xpad = jnp.pad(x_r, ((0, 0), (0, 0),
                         (0, (-D) % pd), (0, (-H) % ph), (0, (-W) % pw)))
    ref = jax.lax.conv_general_dilated(
        xpad, w_r, window_strides=patch_size, padding="VALID",
        dimension_numbers=("NCDHW", "OIDHW", "NCDHW"),
    ) + bias[None, :, None, None, None]

    assert out.shape == ref.shape, (out.shape, ref.shape)
    out_f32 = out.astype(jnp.float32)
    err = float(jnp.max(jnp.abs(out_f32 - ref)))
    assert jnp.allclose(out_f32, ref, atol=3e-3, rtol=3e-3), err

    # channels-last path must match the NCDHW result exactly (same kernel output).
    out_cl = jax.block_until_ready(
        patch_embed_3d(x, weight, bias, patch_size, channels_last=True))
    assert jnp.array_equal(out_cl.transpose(0, 4, 1, 2, 3), out)

    print("KERNEL_OK")
</pallas_src>

<mosaic_0001>
module attributes {stable_mosaic.version = 11 : i64} {
  func.func @_proj_kernel(%arg0: i32, %arg1: memref<160x96xbf16, #tpu.memory_space<vmem>>, %arg2: memref<96x128xbf16, #tpu.memory_space<vmem>>, %arg3: memref<1x128xf32, #tpu.memory_space<vmem>>, %arg4: memref<160x128xbf16, #tpu.memory_space<vmem>>) attributes {dimension_semantics = [#tpu.dimension_semantics<parallel>], iteration_bounds = array<i64: 2>, scalar_prefetch = 0 : i64, scratch_operands = 0 : i64, tpu.core_type = #tpu.core_type<tc>, window_params = [{transform_indices = @transform_0, window_bounds = array<i64: 160, 96>}, {pipeline_mode = #tpu.pipeline_mode<synchronous>, transform_indices = @transform_1, window_bounds = array<i64: 96, 128>}, {pipeline_mode = #tpu.pipeline_mode<synchronous>, transform_indices = @transform_2, window_bounds = array<i64: 1, 128>}, {transform_indices = @transform_3, window_bounds = array<i64: 160, 128>}]} {
    %c0 = arith.constant 0 : index
    %c0_0 = arith.constant 0 : index
    %0 = vector.load %arg1[%c0, %c0_0] : memref<160x96xbf16, #tpu.memory_space<vmem>>, vector<160x96xbf16>
    %c0_1 = arith.constant 0 : index
    %c0_2 = arith.constant 0 : index
    %1 = vector.load %arg2[%c0_1, %c0_2] : memref<96x128xbf16, #tpu.memory_space<vmem>>, vector<96x128xbf16>
    %cst = arith.constant dense<0.000000e+00> : vector<160x128xf32>
    %2 = tpu.matmul %0, %1, %cst {dimension_numbers = #tpu.dot_dimension_numbers<[1], [0], [0], [1], [0, 0, 1, 1], [], []>} : vector<160x96xbf16>, vector<96x128xbf16>, vector<160x128xf32> -> vector<160x128xf32>
    %c0_3 = arith.constant 0 : index
    %c0_4 = arith.constant 0 : index
    %3 = vector.load %arg3[%c0_3, %c0_4] : memref<1x128xf32, #tpu.memory_space<vmem>>, vector<1x128xf32>
    %4 = vector.broadcast %3 : vector<1x128xf32> to vector<160x128xf32>
    %5 = arith.addf %2, %4 : vector<160x128xf32>
    %6 = arith.truncf %5 : vector<160x128xf32> to vector<160x128xbf16>
    %c0_5 = arith.constant 0 : index
    %c0_6 = arith.constant 0 : index
    %7 = vector.load %arg4[%c0_5, %c0_6] : memref<160x128xbf16, #tpu.memory_space<vmem>>, vector<160x128xbf16>
    tpu.vector_store %arg4[%c0_5, %c0_6], %6 {strides = array<i32>} : memref<160x128xbf16, #tpu.memory_space<vmem>>, vector<160x128xbf16>,
    return
  }
  func.func @transform_0(%arg0: i32) -> (i32, i32) {
    %c0_i32 = arith.constant 0 : i32
    %c0_i32_0 = arith.constant 0 : i32
    return %arg0, %c0_i32 : i32, i32
  }
  func.func @transform_1(%arg0: i32) -> (i32, i32) {
    %c0_i32 = arith.constant 0 : i32
    %c0_i32_0 = arith.constant 0 : i32
    %c0_i32_1 = arith.constant 0 : i32
    return %c0_i32, %c0_i32_0 : i32, i32
  }
  func.func @transform_2(%arg0: i32) -> (i32, i32) {
    %c0_i32 = arith.constant 0 : i32
    %c0_i32_0 = arith.constant 0 : i32
    %c0_i32_1 = arith.constant 0 : i32
    return %c0_i32, %c0_i32_0 : i32, i32
  }
  func.func @transform_3(%arg0: i32) -> (i32, i32) {
    %c0_i32 = arith.constant 0 : i32
    %c0_i32_0 = arith.constant 0 : i32
    return %arg0, %c0_i32 : i32, i32
  }
}

</mosaic_0001>

<bundles_post_ra>
// kernel: tpu_custom_call.1
= control target key start
LH: loop header
LB: loop body
LE: loop exit
PB: predicated region body
PF: predicated region fallthrough
CT: control target
= control target key end

     0   :  { %8 = vsyncpa [#allocation3], 0  ;;  %s1168_s0 = inlined_call_operand.vmem [shape: bf16[294,96], index: 0, kind: input, shape index: {}]   ;;  %s1169_s1 = inlined_call_operand.vmem [shape: bf16[96,128], index: 1, kind: input, shape index: {}]   ;;  %s1170_s2 = inlined_call_operand.vmem [shape: f32[1,128], index: 2, kind: input, shape index: {}]   ;;  %s1171_s3 = inlined_call_operand.hbm [shape: bf16[294,128], index: 3, kind: output, shape index: {}]  }
   0x1   :  { %10 = vsyncpa [#allocation3 + $0x1], 0  ;;  %s991_s12 = smov 0   ;;  %s993_s13 = smov 0  }
   0x2   :  { %s995_s14 = smov 0   ;;  %s997_s15 = smov 0  }
   0x3 LB: > { %s1012_s16 = sadd.s32 4294967295, %s966_s15   ;;  %s648_s17 = sadd.s32 4294967294, %s966_s15   ;;  %s966_s15 = sphi %s997_s15, %s1177_s15   ;;  %s962_s14 = sphi %s995_s14, %s1176_s14   ;;  %s958_s13 = sphi %s993_s13, %s1175_s13   ;;  %s954_s12 = sphi %s991_s12, %s1174_s12  }
   0x4   : > { %s1016_s18 = sadd.s32 1, %s966_s15   ;;  %s91_s19 = sadd.s32 1, %s962_s14 }
   0x5   : > { %s88_s20 = ssub.s32 %s966_s15, %s1016_s18  ;;  %p101_p0 = scmp.ne.s32.totalorder %s962_s14, %s958_s13 }
   0x6   : > { %p89_p1 = scmp.eq.s32.totalorder %s88_s20, 0  ;;  %p102_p2 = scmp.eq.s32.totalorder %s1012_s16, 1 }
   0x7   : > { %p107_p3 = scmp.ne.s32.totalorder %s958_s13, %s954_s12  ;;  %p108_p4 = scmp.eq.s32.totalorder %s648_s17, 1 }
   0x8   : > { %s1027_s21 = scalar_select %p89_p1, %s962_s14, %s91_s19  }
   0x9   : > { %p1029_p5 = por %p102_p2, %p101_p0  ;;  %p1033_p6 = por %p108_p4, %p107_p3 }
   0xa   : > { %p651_p7 = scmp.ge.s32.totalorder %s966_s15, 1  ;;  %p149_p8 = scmp.lt.s32.totalorder %s966_s15, 3 }
   0xc   : > { %p150_p9 = pnand %p651_p7, %p149_p8 }
   0xd   : > { %v888_v0 = vld [vmem:[%s1169_s1] sm:$0xff] (!%p150_p9)   ;;  %s1043_s26 = smul.u32 (!%p150_p9), 20, %s1012_s16  ;;  %v889_v1 = vld [vmem:[%s1169_s1 + $0x8] sm:$0xff] (!%p150_p9)   ;;  %v890_v2 = vld [vmem:[%s1169_s1 + $0x10] sm:$0xff] (!%p150_p9)   ;;  %vm322_vm0 = vcmask (!%p150_p9), 785408   ;;  %s174_s24 = sand.u32 (!%p150_p9), 1, %s958_s13  }
   0xe   : > { %153 = sbr.rel (%p150_p9) target bundleno = 302 (0x12e), region = 32  ;;  %803 = vmatprep.subr.bf16.mxu0 (!%p150_p9), %v888_v0  ;;  %835 = vmatprep.subr.bf16.mxu1 (!%p150_p9), %v888_v0  ;;  %v891_v3 = vld [vmem:[%s1169_s1 + $0x18] sm:$0xff] (!%p150_p9)   ;;  %v892_v6 = vld [vmem:[%s1169_s1 + $0x20] sm:$0xff] (!%p150_p9)   ;;  %v893_v7 = vld [vmem:[%s1169_s1 + $0x28] sm:$0xff] (!%p150_p9)   ;;  %s1107_s30 = scalar_lea.sflag (!%p150_p9), [#allocation3], %s174_s24 }
   0xf   : > { %p182_p10 = scmp.lt.s32.totalorder (!%p150_p9), %s1043_s26, 36  ;;  %804 = vmatpush3.bf16.msra.mxu0 (!%p150_p9), %v888_v0  ;;  %841 = vmatpush3.bf16.msra.mxu1 (!%p150_p9), %v888_v0  ;;  %v653_v17 = vld [vmem:[%s1170_s2] ss:$0 sm:$0xff] (!%p150_p9)  ;;  %s847_s28 = smul.u32 (!%p150_p9), 80, %s174_s24 }
  0x10   : > { %805 = vmatprep.subr.bf16.mxu0 (!%p150_p9), %v889_v1  ;;  %836 = vmatprep.subr.bf16.mxu1 (!%p150_p9), %v889_v1 }
  0x11   : > { %s1093_s29 = scalar_lea.vmem (!%p150_p9), [#allocation2], %s847_s28 }
  0x13   : > { %806 = vmatpush3.bf16.msra.mxu0 (!%p150_p9), %v889_v1  ;;  %842 = vmatpush3.bf16.msra.mxu1 (!%p150_p9), %v889_v1 }
  0x14   : > { %807 = vmatprep.subr.bf16.mxu0 (!%p150_p9), %v890_v2  ;;  %837 = vmatprep.subr.bf16.mxu1 (!%p150_p9), %v890_v2 }
  0x15   : > { %s183_s4 = scalar_select %p182_p10, %s1043_s26, 36 }
  0x17   : > { %s652_s5 = sshll.u32 %s183_s4, 2  ;;  %808 = vmatpush3.bf16.msra.mxu0 %v890_v2  ;;  %843 = vmatpush3.bf16.msra.mxu1 %v890_v2  ;;  %s575_s4 = ssub.s32 (%p1029_p5), 37, %s1043_s26 }
  0x18   : > { %s1059_s10 = scalar_lea.vmem %s1168_s0, %s652_s5  ;;  %809 = vmatprep.subr.bf16.mxu0 %v891_v3  ;;  %838 = vmatprep.subr.bf16.mxu1 %v891_v3  ;;  %p576_p11 = scmp.lt.s32.totalorder (%p1029_p5), %s575_s4, 20 }
  0x19   : > { %v894_v4 = vld [vmem:[%s1059_s10] sm:$0xff]   ;;  %v896_v5 = vld [vmem:[%s1059_s10 + $0x30] sm:$0xff]   ;;  %v895_v8 = vld [vmem:[%s1059_s10 + $0x8] sm:$0xff]  }
  0x1a   : > { %815 = vmatprep.mubr.msk.bf16.mxu0 %vm322_vm0, %v894_v4  ;;  %827 = vmatprep.mubr.msk.bf16.mxu1 %vm322_vm0, %v896_v5  ;;  %v897_v9 = vld [vmem:[%s1059_s10 + $0x38] sm:$0xff]   ;;  %v898_v10 = vld [vmem:[%s1059_s10 + $0x10] sm:$0xff]   ;;  %v900_v11 = vld [vmem:[%s1059_s10 + $0x40] sm:$0xff]  }
  0x1b   : > { %810 = vmatpush3.bf16.msra.mxu0 %v891_v3  ;;  %844 = vmatpush3.bf16.msra.mxu1 %v891_v3  ;;  %v899_v12 = vld [vmem:[%s1059_s10 + $0x18] sm:$0xff]   ;;  %v901_v13 = vld [vmem:[%s1059_s10 + $0x48] sm:$0xff]   ;;  %v902_v14 = vld [vmem:[%s1059_s10 + $0x20] sm:$0xff]  }
  0x1c   : > { %811 = vmatprep.subr.bf16.mxu0 %v892_v6  ;;  %839 = vmatprep.subr.bf16.mxu1 %v892_v6  ;;  %v903_v15 = vld [vmem:[%s1059_s10 + $0x28] sm:$0xff]  }
  0x1f   : > { %812 = vmatpush3.bf16.msra.mxu0 %v892_v6  ;;  %845 = vmatpush3.bf16.msra.mxu1 %v892_v6 }
  0x20   : > { %813 = vmatprep.subr.bf16.mxu0 %v893_v7  ;;  %840 = vmatprep.subr.bf16.mxu1 %v893_v7 }
  0x23   : > { %814 = vmatpush3.bf16.msra.mxu0 %v893_v7  ;;  %846 = vmatpush3.bf16.msra.mxu1 %v893_v7 }
  0x26   : > { %816 = vmatmul.mubr.msk.bf16.vlgmr.msra.gmra.mrb[0].mxu0 %vm322_vm0, %v895_v8  ;;  %828 = vmatmul.mubr.msk.bf16.vlgmr.msra.gmra.mrb[0].mxu1 %vm322_vm0, %v897_v9 }
  0x27   : > { %819 = vmatprep.mubr.msk.bf16.mxu0 %vm322_vm0, %v898_v10  ;;  %831 = vmatprep.mubr.msk.bf16.mxu1 %vm322_vm0, %v900_v11 }
  0x2e   : > { %820 = vmatmul.mubr.msk.bf16.gmra.mrb[4].mxu0 %vm322_vm0, %v899_v12  ;;  %832 = vmatmul.mubr.msk.bf16.gmra.mrb[4].mxu1 %vm322_vm0, %v901_v13 }
  0x2f   : > { %823 = vmatprep.mubr.msk.bf16.mxu0 %vm322_vm0, %v902_v14 }
  0x36   : > { %824 = vmatmul.mubr.msk.bf16.gmra.mrb[8].mxu0 %vm322_vm0, %v903_v15 }
  0xf9   : > { %v817_v16 = vpop.f32.mrb[0].mxu0  ;;  %v829_v18 = vpop.f32.mrb[0].mxu1 }
  0xfa   : > { %v387_v19 = vpop.f32.mrb[1].mxu0  ;;  %v444_v20 = vadd.f32 %v829_v18, %v653_v17  ;;  %v435_v21 = vpop.f32.mrb[1].mxu1  ;;  %v396_v25 = vadd.f32 %v817_v16, %v653_v17 }
  0xfb   : > { %v818_v22 = vpop.f32.mrb[2].mxu0  ;;  %v436_v23 = vadd.f32 %v653_v17, %v435_v21  ;;  %v830_v24 = vpop.f32.mrb[2].mxu1  ;;  %v388_v30 = vadd.f32 %v653_v17, %v387_v19 }
  0xfc   : > { %v399_v26 = vadd.f32 %v818_v22, %v653_v17  ;;  %v390_v27 = vpop.f32.mrb[3].mxu0  ;;  %v447_v28 = vadd.f32 %v830_v24, %v653_v17  ;;  %v438_v29 = vpop.f32.mrb[3].mxu1 }
  0xfd   : > { %v391_v31 = vadd.f32 %v653_v17, %v390_v27  ;;  %v439_v32 = vadd.f32 %v653_v17, %v438_v29 }
  0xfe   : > { %v736_v33 = vpack.c.bf16 %v399_v26, %v396_v25  ;;  %v766_v34 = vpack.c.bf16 %v447_v28, %v444_v20 }
  0xff   : > { %v731_v35 = vpack.c.bf16 %v391_v31, %v388_v30  ;;  %v761_v36 = vpack.c.bf16 %v439_v32, %v436_v23 }
 0x100   : > { %778 = vst [vmem:[%s1093_s29 + $0x8] sm:$0xff] %v736_v33   ;;  %784 = vst [vmem:[%s1093_s29 + $0x38] sm:$0xff] %v766_v34  }
 0x101   : > { %732 = vst [vmem:[%s1093_s29] sm:$0xff] %v731_v35   ;;  %v821_v37 = vpop.f32.mrb[4].mxu0  ;;  %783 = vst [vmem:[%s1093_s29 + $0x30] sm:$0xff] %v761_v36   ;;  %v833_v38 = vpop.f32.mrb[4].mxu1 }
 0x102   : > { %v403_v39 = vpop.f32.mrb[5].mxu0  ;;  %v460_v40 = vadd.f32 %v833_v38, %v653_v17  ;;  %v451_v41 = vpop.f32.mrb[5].mxu1  ;;  %v412_v45 = vadd.f32 %v821_v37, %v653_v17 }
 0x103   : > { %v822_v42 = vpop.f32.mrb[6].mxu0  ;;  %v452_v43 = vadd.f32 %v653_v17, %v451_v41  ;;  %v834_v44 = vpop.f32.mrb[6].mxu1  ;;  %v404_v50 = vadd.f32 %v653_v17, %v403_v39 }
 0x104   : > { %v415_v46 = vadd.f32 %v822_v42, %v653_v17  ;;  %v406_v47 = vpop.f32.mrb[7].mxu0  ;;  %v463_v48 = vadd.f32 %v834_v44, %v653_v17  ;;  %v454_v49 = vpop.f32.mrb[7].mxu1 }
 0x105   : > { %v407_v51 = vadd.f32 %v653_v17, %v406_v47  ;;  %v455_v52 = vadd.f32 %v653_v17, %v454_v49 }
 0x106   : > { %v746_v53 = vpack.c.bf16 %v415_v46, %v412_v45  ;;  %v776_v54 = vpack.c.bf16 %v463_v48, %v460_v40 }
 0x107   : > { %v741_v55 = vpack.c.bf16 %v407_v51, %v404_v50  ;;  %v771_v56 = vpack.c.bf16 %v455_v52, %v452_v43 }
 0x108   : > { %780 = vst [vmem:[%s1093_s29 + $0x18] sm:$0xff] %v746_v53   ;;  %786 = vst [vmem:[%s1093_s29 + $0x48] sm:$0xff] %v776_v54  }
 0x109   : > { %779 = vst [vmem:[%s1093_s29 + $0x10] sm:$0xff] %v741_v55   ;;  %v825_v57 = vpop.f32.mrb[8].mxu0  ;;  %785 = vst [vmem:[%s1093_s29 + $0x40] sm:$0xff] %v771_v56  }
 0x10a   : > { %v419_v58 = vpop.f32.mrb[9].mxu0  ;;  %v428_v60 = vadd.f32 %v825_v57, %v653_v17 }
 0x10b   : > { %v826_v59 = vpop.f32.mrb[10].mxu0  ;;  %v420_v63 = vadd.f32 %v653_v17, %v419_v58  ;;  %573 = sbr.rel (!%p1029_p5) target bundleno = 302 (0x12e), region = 36 }
 0x10c   : > { %v431_v61 = vadd.f32 %v826_v59, %v653_v17  ;;  %v422_v62 = vpop.f32.mrb[11].mxu0 }
 0x10d   : > { %v423_v0 = vadd.f32 %v653_v17, %v422_v62 }
 0x10e   : > { %v756_v1 = vpack.c.bf16 %v431_v61, %v428_v60 }
 0x10f   : > { %v751_v2 = vpack.c.bf16 %v423_v0, %v420_v63 }
 0x110   : > { %782 = vst [vmem:[%s1093_s29 + $0x28] sm:$0xff] %v756_v1  }
 0x111   : > { %781 = vst [vmem:[%s1093_s29 + $0x20] sm:$0xff] %v751_v2  }
 0x112   : > { %s1179_s4 = smov (!%p576_p11, %s575_s4), 20 }
 0x113   : > { %s1112_s5 = sshll.u32 %s1179_s4, 6 }
 0x114   : > { %s580_s6 = ssub.s32 1280, %s1112_s5 }
 0x115   : > { %581 = vsyncadd %s1107_s30, %s580_s6  ;;  %p701_p12 = scmp.ne.s32.totalorder %s1112_s5, 0  ;;  %s727_s7 = smul.u32 1280, %s1012_s16 }
 0x116   : > { %s586_s8 = sshll.u32 %s1093_s29, 4  ;;  %s968_s11 = smov [#allocation2]   ;;  %s1124_s8 = int_to_ptr.vmem [resolvable:$true] %s586_s8 }
 0x117   : > { %s1122_s10 = scalar_lea.hbm %s1171_s3, %s727_s7  ;;  %s904_s26 = scalar_lea.vmem %s1124_s8, %s1112_s5 }
 0x118   : > { %p905_p13 = scmp.ne.s32.totalorder %s1124_s8, %s904_s26  ;;  %s908_s17 = sshll.u32 %s968_s11, 4  ;;  %s909_s17 = int_to_ptr.vmem [resolvable:$false] %s908_s17 }
 0x119   : > { %s910_s16 = scalar_lea.vmem %s909_s17, 2560  ;;  %p911_p2 = scmp.lt.s32.totalorder %s1124_s8, %s909_s17 }
 0x11a   : > { %p906_p0 = pnand %p905_p13, %p701_p12  ;;  %p912_p3 = scmp.lt.s32.totalorder %s910_s16, %s904_s26 }
 0x11c   : > { %p907_p1 = pneg %p906_p0  ;;  %p913_p4 = por %p912_p3, %p911_p2 }
 0x11e   : > { %p914_p5 = pnand %p913_p4, %p907_p1 }
 0x120   : > { %917 = shalt.err (!%p914_p5)
}
 0x121   : > { %s918_s19 = scalar_lea.hbm %s1122_s10, %s1112_s5  ;;  %s922_s25 = scalar_lea.hbm %s1171_s3, 2368 }
 0x122   : > { %p919_p7 = scmp.ne.s32.totalorder %s1122_s10, %s918_s19  ;;  %p923_p10 = scmp.lt.u32.totalorder %s1122_s10, %s1171_s3 }
 0x123   : > { %p924_p11 = scmp.lt.u32.totalorder %s922_s25, %s918_s19  ;;  %p926_p0 = scmp.lt.u32.totalorder %s918_s19, %s1122_s10 }
 0x124   : > { %p920_p8 = pnand %p919_p7, %p701_p12 }
 0x125   : > { %p925_p13 = por %p924_p11, %p923_p10 }
 0x126   : > { %p921_p9 = pneg %p920_p8 }
 0x127   : > { %p927_p1 = por %p926_p0, %p925_p13 }
 0x129   : > { %p928_p2 = pnand %p927_p1, %p921_p9 }
 0x12b   : > { %931 = shalt.err (!%p928_p2)
}
 0x12c   : > { %s969_s29 = smov 64   ;;  %s970_s4 = smov 4  }
 0x12d   : > { %592 = dma.vmem_to_hbm [thread:$0]  (%p701_p12), %s1124_s8, %s1112_s5, %s1122_s10, %s1107_s30, %s969_s29, %s969_s29, %s970_s4  }
 0x12e PF: > { %p853_p3 = scmp.ge.s32.totalorder %s966_s15, 2  ;;  %s601_s6 = sand.u32 1, %s954_s12  }
 0x12f   : > { %s602_s7 = scalar_lea.sflag [#allocation3], %s601_s6 }
 0x130   : > { %p850_p4 = pnand %p853_p3, %p1033_p6 }
 0x132   : > { %949 = dma.done.wait (!%p850_p4), %s602_s7, 1280  }
 0x133   : > { %951 = vsyncadd (!%p850_p4), %s602_s7, 4294966016  ;;  %p13_p5 = scmp.ge.s32.totalorder %s1016_s18, 4   ;;  %s1174_s12 = smov %s958_s13 }
 0x134   : > { %s1175_s13 = smov %s962_s14  ;;  %s1176_s14 = smov %s1027_s21 }
 0x135   : > { %s1177_s15 = smov %s1016_s18  ;;  %15 = sbr.rel (!%p13_p5) target bundleno = 3 (0x3), region = 67 }
 0x13c   :  { %607 = vsyncpa [#allocation3], 1 }
 0x13d   :  { %609 = vsyncpa [#allocation3 + $0x1], 1 }

</bundles_post_ra>
